<compile_context>
chip_gen: v5e
topology: v5e:2x2
jax: 0.10.0
libtpu: 0.0.40
codegen_flags: <defaults>
</compile_context>

<pallas_src>
import functools
import math

import numpy as np

import jax
import jax.numpy as jnp
from jax.experimental import pallas as pl
from jax.experimental.pallas import tpu as pltpu


# ----------------------------------------------------------------------------
# Deterministic parameter construction (replica of SincConvFast.__init__)
# ----------------------------------------------------------------------------
def to_mel(hz):
    return 2595.0 * np.log10(1.0 + hz / 700.0)


def to_hz(mel):
    return 700.0 * (10.0 ** (mel / 2595.0) - 1.0)


def make_sinc_params(out_channels, kernel_size, sample_rate=16000,
                     min_low_hz=0, min_band_hz=0):
    """scale_type='s1' initialisation, identical math to the PyTorch module."""
    if kernel_size % 2 == 0:
        kernel_size += 1
    low_hz = 30.0
    high_hz = sample_rate / 2 - (min_low_hz + min_band_hz)
    mel = np.linspace(to_mel(low_hz), to_mel(high_hz), out_channels + 1)
    hz = to_hz(mel)
    low_hz_ = hz[:-1].reshape(-1, 1).astype(np.float32)            # (C, 1)
    band_hz_ = np.diff(hz).reshape(-1, 1).astype(np.float32)       # (C, 1)

    half = int(kernel_size / 2)
    n_lin = np.linspace(0.0, kernel_size / 2 - 1, num=half)
    window_ = (0.54 - 0.46 * np.cos(2 * math.pi * n_lin / kernel_size))
    window_ = window_.reshape(1, -1).astype(np.float32)            # (1, half)

    n = (kernel_size - 1) / 2.0
    n_ = (2 * math.pi * np.arange(-n, 0.0) / sample_rate)
    n_ = n_.reshape(1, -1).astype(np.float32)                      # (1, half)
    return kernel_size, low_hz_, band_hz_, n_, window_


def _round_up(x, m):
    return ((x + m - 1) // m) * m


# ----------------------------------------------------------------------------
# Kernel 1: build the sinc band-pass filter bank (C, K_pad) in VMEM
# ----------------------------------------------------------------------------
def _sinc_filter_kernel(low_ref, band_ref, n_ref, scale_ref, center_ref,
                        filt_ref, *, min_low_hz, min_band_hz, sample_rate):
    low = min_low_hz + jnp.abs(low_ref[...])                          # (C, 1)
    high = jnp.clip(low + min_band_hz + jnp.abs(band_ref[...]),
                    min_low_hz, sample_rate / 2)                      # (C, 1)
    band = high - low                                                 # (C, 1)
    # NOTE: same 0/0 hazard as the PyTorch original when band == 0.
    inv_denom = 1.0 / (2.0 * band)                                    # (C, 1)

    n = n_ref[...]                                                    # (1, K_pad)
    sc = scale_ref[...]                                               # (1, K_pad) = window * 2/n (0 at center/pad)
    ctr = center_ref[...]                                             # (1, K_pad) one-hot at the center tap

    # left/right taps: (sin(high*n) - sin(low*n)) * window/(n/2); center: 2*band;
    # lane padding (K..K_pad-1): n == sc == ctr == 0  ->  exactly 0.
    bp = (jnp.sin(high * n) - jnp.sin(low * n)) * sc + ctr * (2.0 * band)
    filt_ref[...] = bp * inv_denom                                    # single lane-dense store


def build_filters(low_hz_, band_hz_, n_, window_, *, min_low_hz, min_band_hz,
                  sample_rate):
    """Returns ((C, K_pad) float32 filter bank with zero lane padding, K)."""
    C = low_hz_.shape[0]
    half = n_.shape[1]
    K = 2 * half + 1
    K_pad = _round_up(K, 128)

    # Host-built helper vectors: n_full / scale_full hold the left half, a zero
    # at the center, the lane-FLIPPED left half (== torch.flip of the left
    # band-pass), and zeros in the K..K_pad-1 padding lanes.
    scale = (window_ * (2.0 / n_)).astype(np.float32)                 # window / (n/2)
    n_full = np.zeros((1, K_pad), np.float32)
    scale_full = np.zeros((1, K_pad), np.float32)
    center = np.zeros((1, K_pad), np.float32)
    n_full[0, :half] = n_[0]
    n_full[0, half + 1:K] = n_[0, ::-1]
    scale_full[0, :half] = scale[0]
    scale_full[0, half + 1:K] = scale[0, ::-1]
    center[0, half] = 1.0

    kern = functools.partial(
        _sinc_filter_kernel,
        min_low_hz=float(min_low_hz),
        min_band_hz=float(min_band_hz),
        sample_rate=float(sample_rate),
    )
    filt = pl.pallas_call(
        kern,
        out_shape=jax.ShapeDtypeStruct((C, K_pad), jnp.float32),
        in_specs=[pl.BlockSpec(memory_space=pltpu.MemorySpace.VMEM)] * 5,
        out_specs=pl.BlockSpec(memory_space=pltpu.MemorySpace.VMEM),
    )(jnp.asarray(low_hz_), jnp.asarray(band_hz_), jnp.asarray(n_full),
      jnp.asarray(scale_full), jnp.asarray(center))
    return filt, K


# ----------------------------------------------------------------------------
# Kernel 2: valid conv1d via im2col + MXU matmul
#   (B, 1, T_pad) * (C, K_pad) -> (B, C, t_out), time-tiled by TILE_T
# ----------------------------------------------------------------------------
def _sinc_conv_kernel(filt_ref, x_ref, o_ref, im2col_ref, *,
                      k_fill, k_pad, tile_t, grid_t):
    # filt_ref : (C, K_pad)   resident, zero-padded lanes K..K_pad-1
    # x_ref    : (1, 1, T_pad) one (zero-padded) waveform, resident per batch
    # o_ref    : (1, C, tile_t) current output tile (last tile masked by Pallas)
    # im2col   : (K_pad, tile_t) VMEM scratch
    i = pl.program_id(0)
    t_idx = i % grid_t                                   # time-tile index
    t_off = pl.multiple_of(t_idx * tile_t, 128)

    # Fill only the round_up(K, 8) rows that can carry non-zero filter taps.
    # Row k of the im2col matrix = x[t_off + k : t_off + k + tile_t]; rows
    # K..k_fill-1 read valid (zero-padded) samples and the matching zero
    # filter lanes null their contribution.
    if k_fill <= 512:
        # Static unroll: each load offset is compile-time constant mod 128.
        for k in range(k_fill):
            im2col_ref[pl.ds(k, 1), :] = x_ref[0, :, pl.ds(t_off + k, tile_t)]
    else:
        def fill_row(k, carry):
            im2col_ref[pl.ds(k, 1), :] = x_ref[0, :, pl.ds(t_off + k, tile_t)]
            return carry
        jax.lax.fori_loop(0, k_fill, fill_row, 0, unroll=8)

    # Bulk-zero the scratch tail (uninitialized/persistent VMEM) so stale
    # values can never leak through the matmul.  Unmasked multi-sublane store,
    # much cheaper per row than the data fill above.
    if k_pad > k_fill:
        im2col_ref[pl.ds(k_fill, k_pad - k_fill), :] = jnp.zeros(
            (k_pad - k_fill, tile_t), dtype=im2col_ref.dtype)

    o_ref[0] = jnp.dot(filt_ref[...], im2col_ref[...],
                       preferred_element_type=jnp.float32).astype(o_ref.dtype)


def sinc_conv_fast(x, filters_padded, kernel_size, *, tile_t=2048,
                   stride=1, padding=0, dilation=1):
    """x: (B, 1, T) float32, filters_padded: (C, K_pad) -> (B, C, T-K+1)."""
    if not (stride == 1 and padding == 0 and dilation == 1):
        # TODO(synk): stride/padding/dilation other than the module defaults.
        raise NotImplementedError("only stride=1, padding=0, dilation=1")
    B, in_ch, T = x.shape
    assert in_ch == 1, "SincConv only supports one input channel"
    C, K_pad = filters_padded.shape
    K = kernel_size
    K_fill = _round_up(K, 8)                       # rows with real taps
    assert K_pad % 128 == 0 and K_pad >= K_fill
    t_out = T - K + 1
    assert t_out > 0

    # Lane-dense 128-multiple time tile, clamped so a tiny input does not get
    # a mostly-masked huge tile.
    tile_t = max(128, min(_round_up(tile_t, 128), _round_up(t_out, 128)))
    grid_t = pl.cdiv(t_out, tile_t)
    T_pad = _round_up(grid_t * tile_t + K_fill, 128)   # covers all im2col reads
    x_pad = jnp.pad(x, ((0, 0), (0, 0), (0, T_pad - T)))

    # Flat parallel grid over (batch, time-tile): megacore splits real work
    # even for B=1/2, and the waveform block index only changes every grid_t
    # steps so it stays resident per batch.
    grid = (B * grid_t,)

    # Explicit VMEM budget (double-buffered blocks + scratch) with headroom;
    # stays well under v7x's 64 MiB for the default tile.
    need = (2 * C * K_pad * 4 + 2 * T_pad * 4 + 2 * C * tile_t * 4
            + K_pad * tile_t * 4)
    vmem_limit = int(min(max(2 * need, 32 * 2 ** 20), 100 * 2 ** 20))

    kern = functools.partial(_sinc_conv_kernel, k_fill=K_fill, k_pad=K_pad,
                             tile_t=tile_t, grid_t=grid_t)
    out = pl.pallas_call(
        kern,
        out_shape=jax.ShapeDtypeStruct((B, C, t_out), jnp.float32),
        grid=grid,
        in_specs=[
            pl.BlockSpec((C, K_pad), lambda i: (0, 0)),              # filter bank (resident)
            pl.BlockSpec((1, 1, T_pad), lambda i: (i // grid_t, 0, 0)),  # one waveform / batch
        ],
        out_specs=pl.BlockSpec((1, C, tile_t),
                               lambda i: (i // grid_t, 0, i % grid_t)),
        scratch_shapes=[pltpu.VMEM((K_pad, tile_t), jnp.float32)],
        compiler_params=pltpu.CompilerParams(
            dimension_semantics=("parallel",),
            vmem_limit_bytes=vmem_limit),
    )(filters_padded, x_pad)
    return out


# ----------------------------------------------------------------------------
# Demo / sanity check
# ----------------------------------------------------------------------------
if __name__ == "__main__":
    B = 2
    T = 512
    out_channels = 16
    kernel_size = 64          # even -> module bumps it to 65
    sample_rate = 16000
    min_low_hz = 0
    min_band_hz = 0

    K, low_hz_, band_hz_, n_, window_ = make_sinc_params(
        out_channels, kernel_size, sample_rate, min_low_hz, min_band_hz)

    key = jax.random.PRNGKey(0)
    x = jax.random.normal(key, (B, 1, T), dtype=jnp.float32)

    filters, K = build_filters(low_hz_, band_hz_, n_, window_,
                               min_low_hz=min_low_hz,
                               min_band_hz=min_band_hz,
                               sample_rate=sample_rate)
    out = sinc_conv_fast(x, filters, K)               # tile_t auto-clamped to 512
    out = jax.block_until_ready(out)

    # pure-jnp reference with the same math (forward-pass semantics check)
    low = min_low_hz + jnp.abs(jnp.asarray(low_hz_))
    high = jnp.clip(low + min_band_hz + jnp.abs(jnp.asarray(band_hz_)),
                    min_low_hz, sample_rate / 2)
    band = (high - low)[:, 0]
    nj = jnp.asarray(n_)
    winj = jnp.asarray(window_)
    left = (jnp.sin(high * nj) - jnp.sin(low * nj)) / (nj / 2.0) * winj
    bp = jnp.concatenate([left, 2.0 * band[:, None], jnp.flip(left, axis=1)],
                         axis=1)
    bp = bp / (2.0 * band[:, None])
    ref = jax.lax.conv_general_dilated(
        x, bp[:, None, :], window_strides=(1,), padding="VALID",
        dimension_numbers=("NCH", "OIH", "NCH"),
        precision=jax.lax.Precision.HIGHEST)

    t_out = T - K + 1
    assert out.shape == (B, out_channels, t_out), out.shape
    assert jnp.allclose(filters[:, :K], bp, rtol=1e-4, atol=1e-4), \
        float(jnp.max(jnp.abs(filters[:, :K] - bp)))
    assert jnp.allclose(out, ref, rtol=2e-2, atol=2e-2), \
        float(jnp.max(jnp.abs(out - ref)))
    print("KERNEL_OK")
</pallas_src>

<mosaic_0001>
module attributes {stable_mosaic.version = 11 : i64} {
  func.func @_sinc_filter_kernel(%arg0: memref<16x1xf32, #tpu.memory_space<vmem>>, %arg1: memref<16x1xf32, #tpu.memory_space<vmem>>, %arg2: memref<1x128xf32, #tpu.memory_space<vmem>>, %arg3: memref<1x128xf32, #tpu.memory_space<vmem>>, %arg4: memref<1x128xf32, #tpu.memory_space<vmem>>, %arg5: memref<16x128xf32, #tpu.memory_space<vmem>>) attributes {dimension_semantics = [], scalar_prefetch = 0 : i64, scratch_operands = 0 : i64, tpu.core_type = #tpu.core_type<tc>} {
    %c0 = arith.constant 0 : index
    %c0_0 = arith.constant 0 : index
    %0 = vector.load %arg0[%c0, %c0_0] : memref<16x1xf32, #tpu.memory_space<vmem>>, vector<16x1xf32>
    %1 = math.absf %0 : vector<16x1xf32>
    %cst = arith.constant 0.000000e+00 : f32
    %2 = vector.broadcast %cst : f32 to vector<16x1xf32>
    %3 = arith.addf %2, %1 : vector<16x1xf32>
    %cst_1 = arith.constant 0.000000e+00 : f32
    %4 = vector.broadcast %cst_1 : f32 to vector<16x1xf32>
    %5 = arith.addf %3, %4 : vector<16x1xf32>
    %c0_2 = arith.constant 0 : index
    %c0_3 = arith.constant 0 : index
    %6 = vector.load %arg1[%c0_2, %c0_3] : memref<16x1xf32, #tpu.memory_space<vmem>>, vector<16x1xf32>
    %7 = math.absf %6 : vector<16x1xf32>
    %8 = arith.addf %5, %7 : vector<16x1xf32>
    %cst_4 = arith.constant 0.000000e+00 : f32
    %cst_5 = arith.constant 8.000000e+03 : f32
    %9 = vector.broadcast %cst_4 : f32 to vector<16x1xf32>
    %10 = arith.maximumf %9, %8 : vector<16x1xf32>
    %11 = vector.broadcast %cst_5 : f32 to vector<16x1xf32>
    %12 = arith.minimumf %11, %10 : vector<16x1xf32>
    %13 = arith.subf %12, %3 : vector<16x1xf32>
    %cst_6 = arith.constant 2.000000e+00 : f32
    %14 = vector.broadcast %cst_6 : f32 to vector<16x1xf32>
    %15 = arith.mulf %14, %13 : vector<16x1xf32>
    %cst_7 = arith.constant 1.000000e+00 : f32
    %16 = vector.broadcast %cst_7 : f32 to vector<16x1xf32>
    %17 = arith.divf %16, %15 : vector<16x1xf32>
    %c0_8 = arith.constant 0 : index
    %c0_9 = arith.constant 0 : index
    %18 = vector.load %arg2[%c0_8, %c0_9] : memref<1x128xf32, #tpu.memory_space<vmem>>, vector<1x128xf32>
    %c0_10 = arith.constant 0 : index
    %c0_11 = arith.constant 0 : index
    %19 = vector.load %arg3[%c0_10, %c0_11] : memref<1x128xf32, #tpu.memory_space<vmem>>, vector<1x128xf32>
    %c0_12 = arith.constant 0 : index
    %c0_13 = arith.constant 0 : index
    %20 = vector.load %arg4[%c0_12, %c0_13] : memref<1x128xf32, #tpu.memory_space<vmem>>, vector<1x128xf32>
    %21 = vector.broadcast %12 : vector<16x1xf32> to vector<16x128xf32>
    %22 = vector.broadcast %18 : vector<1x128xf32> to vector<16x128xf32>
    %23 = arith.mulf %21, %22 : vector<16x128xf32>
    %24 = math.sin %23 : vector<16x128xf32>
    %25 = vector.broadcast %3 : vector<16x1xf32> to vector<16x128xf32>
    %26 = vector.broadcast %18 : vector<1x128xf32> to vector<16x128xf32>
    %27 = arith.mulf %25, %26 : vector<16x128xf32>
    %28 = math.sin %27 : vector<16x128xf32>
    %29 = arith.subf %24, %28 : vector<16x128xf32>
    %30 = vector.broadcast %19 : vector<1x128xf32> to vector<16x128xf32>
    %31 = arith.mulf %29, %30 : vector<16x128xf32>
    %cst_14 = arith.constant 2.000000e+00 : f32
    %32 = vector.broadcast %cst_14 : f32 to vector<16x1xf32>
    %33 = arith.mulf %32, %13 : vector<16x1xf32>
    %34 = vector.broadcast %20 : vector<1x128xf32> to vector<16x128xf32>
    %35 = vector.broadcast %33 : vector<16x1xf32> to vector<16x128xf32>
    %36 = arith.mulf %34, %35 : vector<16x128xf32>
    %37 = arith.addf %31, %36 : vector<16x128xf32>
    %38 = vector.broadcast %17 : vector<16x1xf32> to vector<16x128xf32>
    %39 = arith.mulf %37, %38 : vector<16x128xf32>
    %c0_15 = arith.constant 0 : index
    %c0_16 = arith.constant 0 : index
    %40 = vector.load %arg5[%c0_15, %c0_16] : memref<16x128xf32, #tpu.memory_space<vmem>>, vector<16x128xf32>
    tpu.vector_store %arg5[%c0_15, %c0_16], %39 {strides = array<i32>} : memref<16x128xf32, #tpu.memory_space<vmem>>, vector<16x128xf32>,
    return
  }
}

</mosaic_0001>

<bundles_post_ra>
// kernel: tpu_custom_call.1
= control target key start
LH: loop header
LB: loop body
LE: loop exit
PB: predicated region body
PF: predicated region fallthrough
CT: control target
= control target key end

     0   :  { %v837_v3 = vmov 0   ;;  %s1303_s0 = inlined_call_operand.vmem [shape: f32[16,1], index: 0, kind: input, shape index: {}]   ;;  %s1304_s1 = inlined_call_operand.vmem [shape: f32[16,1], index: 1, kind: input, shape index: {}]   ;;  %s1305_s2 = inlined_call_operand.vmem [shape: f32[1,128], index: 2, kind: input, shape index: {}]   ;;  %s1306_s3 = inlined_call_operand.vmem [shape: f32[1,128], index: 3, kind: input, shape index: {}]   ;;  %s1307_s4 = inlined_call_operand.vmem [shape: f32[1,128], index: 4, kind: input, shape index: {}]   ;;  %s1308_s5 = inlined_call_operand.hbm [shape: f32[16,128], index: 5, kind: output, shape index: {}]  }
   0x1   :  { %v21_v0 = vld [vmem:[%s1303_s0] sm:$0xff]  ;;  %v22_v2 = vld [vmem:[%s1303_s0 + $0x8] sm:$0xff]  ;;  %802 = vset.pattern.permute.xlu1 %v837_v3  ;;  %801 = vset.pattern.permute.xlu0 %v837_v3 }
   0x2   :  { %v29_v1 = vld [vmem:[%s1304_s1] sm:$0xff]  ;;  %v23_v4 = vand.u32 2147483647, %v21_v0  ;;  %v24_v6 = vand.u32 2147483647, %v22_v2  ;;  %v30_v7 = vld [vmem:[%s1304_s1 + $0x8] sm:$0xff]  ;;  %803 = vset.pattern.permute.xlu2 %v837_v3 }
   0x3   :  { %v31_v5 = vand.u32 2147483647, %v29_v1  ;;  %v32_v9 = vand.u32 2147483647, %v30_v7 }
   0x4   :  { %403 = vperm.xlu1 %802, %v23_v4  }
   0x5   :  { %v33_v8 = vadd.f32 %v31_v5, %v23_v4  ;;  %v34_v11 = vadd.f32 %v32_v9, %v24_v6 }
   0x7   :  { %v35_v10 = vmax.f32 %v33_v8, 0.0 }
   0x8   :  { %10 = vsyncpa [#allocation3], 0  ;;  %v36_v13 = vmax.f32 %v34_v11, 0.0  ;;  %v895_v39 = vld [vmem:[%s1305_s2] ss:$0 sm:$0xff]  ;;  %s767_s6 = sshll.u32 %s1308_s5, 4  ;;  %s768_s6 = int_to_ptr.hbm [resolvable:$true] %s767_s6 }
   0x9   :  { %v37_v12 = vmin.f32 %v35_v10, 8000.0  ;;  %v838_v59 = vmov 683565275   ;;  %v839_v61 = vmov 2475754826   ;;  %s845_s7 = smov 128  }
   0xa   :  { %v38_v15 = vmin.f32 %v36_v13, 8000.0  ;;  %v840_v63 = vmov 2131351028   ;;  %v841_v1 = vmov 2102212464   ;;  %s846_s8 = smov 8  }
   0xb   :  { %78 = vperm.xlu0 %801, %v37_v12   ;;  %v39_v14 = vsub.f32 %v37_v12, %v23_v4  ;;  %v842_v4 = vmov 920167782   ;;  %v843_v13 = vmov 1326507024  }
   0xc   :  { %408 = vperm.xlu1 %802, %v24_v6   ;;  %v40_v17 = vsub.f32 %v38_v15, %v24_v6 }
   0xd   :  { %v41_v16 = vmul.f32 2.0, %v39_v14 }
   0xe   :  { %v42_v18 = vmul.f32 2.0, %v40_v17 }
   0xf   :  { %807 = vrcp.f32 %v41_v16  ;;  %735 = vperm.xlu2 %803, %v41_v16   ;;  %vm48_vm0 = vweird.f32 %v41_v16  ;;  %v54_v22 = vand.u32 2147483648, %v41_v16  ;;  %v52_v25 = vand.u32 2147483647, %v41_v16 }
  0x10   :  { %809 = vrcp.f32 %v42_v18  ;;  %vm63_vm2 = vweird.f32 %v42_v18  ;;  %v69_v26 = vand.u32 2147483648, %v42_v18  ;;  %v67_v28 = vand.u32 2147483647, %v42_v18 }
  0x11   :  { %v55_v30 = vor.u32 1.1754944e-38, %v54_v22  ;;  %vm53_vm5 = vcmp.eq.f32.partialorder %v52_v25, 8.507059e+37 }
  0x12   :  { %v70_v33 = vor.u32 1.1754944e-38, %v69_v26  ;;  %vm68_vm7 = vcmp.eq.f32.partialorder %v67_v28, 8.507059e+37 }
  0x13   :  { %83 = vperm.xlu0 %801, %v38_v15  }
  0x15   :  { %v808_v19 = vpop.eup %807 }
  0x16   :  { %v44_v20 = vmul.f32 %v808_v19, %v41_v16  ;;  %v810_v21 = vpop.eup %809  ;;  %vm49_vm1 = vweird.f32 %v808_v19 }
  0x17   :  { %740 = vperm.xlu2 %803, %v42_v18   ;;  %v59_v23 = vmul.f32 %v810_v21, %v42_v18  ;;  %vm64_vm3 = vweird.f32 %v810_v21  ;;  %vm50_vm4 = vmor %vm48_vm0, %vm49_vm1 }
  0x18   :  { %v45_v24 = vsub.f32 1.0, %v44_v20  ;;  %vm65_vm6 = vmor %vm63_vm2, %vm64_vm3 }
  0x19   :  { %v60_v27 = vsub.f32 1.0, %v59_v23 }
  0x1a   :  { %v46_v29 = vmul.f32 %v808_v19, %v45_v24 }
  0x1b   :  { %v61_v31 = vmul.f32 %v810_v21, %v60_v27 }
  0x1c   :  { %v47_v32 = vadd.f32 %v808_v19, %v46_v29 }
  0x1d   :  { %v62_v34 = vadd.f32 %v810_v21, %v61_v31 }
  0x1e   :  { %v51_v35 = vsel %vm50_vm4, %v808_v19, %v47_v32 }
  0x1f   :  { %v56_v36 = vsel %vm53_vm5, %v55_v30, %v51_v35  ;;  %v66_v37 = vsel %vm65_vm6, %v810_v21, %v62_v34 }
  0x20   :  { %749 = vperm.xlu0 %801, %v56_v36   ;;  %v71_v38 = vsel %vm68_vm7, %v70_v33, %v66_v37 }
  0x21   :  { %754 = vperm.xlu1 %802, %v71_v38  }
  0x76   :  { %v404_v40 = vpop.permute.xlu1 %403 }
  0x77   :  { %v898_v41 = vmul.f32 %v895_v39, %v404_v40 }
  0x79   :  { %v416_v42 = vand.u32 2139095040, %v898_v41  ;;  %v413_v43 = vand.u32 2147483647, %v898_v41 }
  0x7b   :  { %v417_v44 = vshrl.u32 %v416_v42, 23  ;;  %v420_v48 = vand.u32 8388607, %v413_v43 }
  0x7d   :  { %v79_v45 = vpop.permute.xlu0 %78  ;;  %v785_v46 = vadd.s32 4294967169, %v417_v44  ;;  %v421_v51 = vor.u32 8388608, %v420_v48 }
  0x7e   :  { %v903_v47 = vmul.f32 %v895_v39, %v79_v45  ;;  %v409_v32 = vpop.permute.xlu1 %408 }
  0x7f   :  { %v423_v49 = vadd.s32 1, %v785_v46  ;;  %v914_v6 = vshll.u32 %v421_v51, 8  ;;  %v937_v46 = vmul.f32 %v895_v39, %v409_v32 }
  0x80   :  { %v94_v50 = vand.u32 2139095040, %v903_v47  ;;  %v91_v53 = vand.u32 2147483647, %v903_v47 }
  0x81   :  { %vm424_vm8 = vcmp.gt.s32.totalorder %v423_v49, 0  ;;  %v462_v21 = vand.u32 65535, %v914_v6  ;;  %v463_v35 = vshrl.u32 %v914_v6, 16 }
  0x82   :  { %v425_v52 = vsel %vm424_vm8, %v423_v49, 0  ;;  %v95_v54 = vshrl.u32 %v94_v50, 23  ;;  %v98_v7 = vand.u32 8388607, %v91_v53 }
  0x83   :  { %v426_v55 = vshrl.u32 %v425_v52, 5  ;;  %v427_v56 = vand.u32 31, %v425_v52 }
  0x84   :  { %v779_v57 = vadd.s32 4294967169, %v95_v54  ;;  %v99_v25 = vor.u32 8388608, %v98_v7 }
  0x85   :  { %v428_v58 = vsub.s32 32, %v427_v56  ;;  %v430_v60 = vshll.u32 %v838_v59, %v427_v56  ;;  %v433_v62 = vshll.u32 %v839_v61, %v427_v56  ;;  %v436_v0 = vshll.u32 %v840_v63, %v427_v56 }
  0x86   :  { %v439_v2 = vshll.u32 %v841_v1, %v427_v56  ;;  %v442_v5 = vshll.u32 %v842_v4, %v427_v56  ;;  %vm445_vm9 = vcmp.lt.s32.totalorder %v426_v55, 1  ;;  %vm448_vm10 = vcmp.lt.s32.totalorder %v426_v55, 4 }
  0x87   :  { %v431_v8 = vshrl.u32 %v839_v61, %v428_v58  ;;  %v434_v9 = vshrl.u32 %v840_v63, %v428_v58  ;;  %v437_v10 = vshrl.u32 %v841_v1, %v428_v58  ;;  %v429_v11 = vshrl.u32 %v838_v59, %v428_v58 }
  0x88   :  { %v440_v12 = vshrl.u32 %v842_v4, %v428_v58  ;;  %v443_v14 = vshrl.u32 %v843_v13, %v428_v58  ;;  %v101_v18 = vadd.s32 1, %v779_v57  ;;  %vm447_vm11 = vcmp.lt.s32.totalorder %v426_v55, 3 }
  0x89   :  { %v432_v15 = vor.u32 %v431_v8, %v430_v60  ;;  %v435_v16 = vor.u32 %v434_v9, %v433_v62  ;;  %v438_v17 = vor.u32 %v437_v10, %v436_v0  ;;  %vm446_vm12 = vcmp.lt.s32.totalorder %v426_v55, 2 }
  0x8a   :  { %v441_v19 = vor.u32 %v440_v12, %v439_v2  ;;  %v444_v20 = vor.u32 %v443_v14, %v442_v5  ;;  %vm102_vm13 = vcmp.gt.s32.totalorder %v101_v18, 0  ;;  %v934_v45 = vshll.u32 %v99_v25, 8 }
  0x8b   :  { %v450_v22 = vsel %vm448_vm10, %v438_v17, 2102212464  ;;  %v453_v23 = vsel %vm445_vm9, %v432_v15, %v435_v16  ;;  %v457_v24 = vsel %vm445_vm9, %v435_v16, %v438_v17  ;;  %v449_v28 = vsel %vm445_vm9, %v429_v11, %v432_v15 }
  0x8c   :  { %v454_v26 = vsel %vm448_vm10, %v441_v19, 920167782  ;;  %v458_v27 = vsel %vm448_vm10, %v444_v20, 1326507024  ;;  %v451_v29 = vsel %vm447_vm11, %v435_v16, %v450_v22  ;;  %v103_v36 = vsel %vm102_vm13, %v101_v18, 0 }
  0x8d   :  { %v455_v30 = vsel %vm447_vm11, %v438_v17, %v454_v26  ;;  %v459_v31 = vsel %vm447_vm11, %v441_v19, %v458_v27  ;;  %v932_v44 = vsel %vm446_vm12, %v449_v28, %v451_v29  ;;  %v939_v50 = vshrl.u32 %v103_v36, 5 }
  0x8e   :  { %v456_v33 = vsel %vm446_vm12, %v453_v23, %v455_v30  ;;  %v460_v34 = vsel %vm446_vm12, %v457_v24, %v459_v31  ;;  %v105_v51 = vand.u32 31, %v103_v36 }
  0x8f   :  { %v464_v37 = vand.u32 65535, %v460_v34  ;;  %v465_v38 = vshrl.u32 %v460_v34, 16  ;;  %v486_v40 = vand.u32 65535, %v456_v33  ;;  %v487_v42 = vshrl.u32 %v456_v33, 16 }
  0x90   :  { %v106_v10 = vsub.s32 32, %v105_v51  ;;  %v108_v17 = vshll.u32 %v838_v59, %v105_v51  ;;  %v111_v20 = vshll.u32 %v839_v61, %v105_v51  ;;  %v114_v26 = vshll.u32 %v840_v63, %v105_v51 }
  0x91   :  { %v467_v48 = vmul.u32 %v465_v38, %v462_v21  ;;  %v468_v49 = vmul.u32 %v464_v37, %v463_v35  ;;  %v466_v52 = vmul.u32 %v464_v37, %v462_v21  ;;  %v469_v54 = vmul.u32 %v465_v38, %v463_v35 }
  0x92   :  { %v489_v56 = vmul.u32 %v487_v42, %v462_v21  ;;  %v490_v57 = vmul.u32 %v486_v40, %v463_v35  ;;  %v488_v62 = vmul.u32 %v486_v40, %v462_v21  ;;  %v491_v55 = vmul.u32 %v487_v42, %v463_v35 }
  0x93   :  { %v470_v58 = vshll.u32 %v467_v48, 16  ;;  %v471_v60 = vshrl.u32 %v467_v48, 16  ;;  %v472_v0 = vshll.u32 %v468_v49, 16  ;;  %v473_v2 = vshrl.u32 %v468_v49, 16 }
  0x94   :  { %v492_v5 = vshll.u32 %v489_v56, 16  ;;  %v493_v7 = vshrl.u32 %v489_v56, 16  ;;  %v494_v9 = vshll.u32 %v490_v57, 16  ;;  %v495_v12 = vshrl.u32 %v490_v57, 16 }
  0x95   :  { %vm474_vm14 = vc.u32 %v466_v52, %v470_v58  ;;  %v476_v8 = vadd.s32 %v470_v58, %v466_v52  ;;  %v109_v23 = vshrl.u32 %v839_v61, %v106_v10  ;;  %v112_v24 = vshrl.u32 %v840_v63, %v106_v10 }
  0x96   :  { %v475_v11 = vsel %vm474_vm14, 1, %v837_v3  ;;  %vm496_vm15 = vc.u32 %v488_v62, %v492_v5  ;;  %v498_v14 = vadd.s32 %v492_v5, %v488_v62  ;;  %v115_v27 = vshrl.u32 %v841_v1, %v106_v10 }
  0x97   :  { %v477_v15 = vadd.s32 %v475_v11, %v469_v54  ;;  %vm478_vm0 = vc.u32 %v476_v8, %v472_v0  ;;  %v497_v16 = vsel %vm496_vm15, 1, %v837_v3  ;;  %v117_v28 = vshll.u32 %v841_v1, %v105_v51 }
  0x98   :  { %v479_v18 = vsel %vm478_vm0, 1, %v837_v3  ;;  %v499_v19 = vadd.s32 %v497_v16, %v491_v55  ;;  %vm500_vm1 = vc.u32 %v498_v14, %v494_v9  ;;  %v110_v30 = vor.u32 %v109_v23, %v108_v17 }
  0x99   :  { %v481_v21 = vadd.s32 %v479_v18, %v477_v15  ;;  %v501_v22 = vsel %vm500_vm1, 1, %v837_v3  ;;  %v113_v31 = vor.u32 %v112_v24, %v111_v20  ;;  %v118_v32 = vshrl.u32 %v842_v4, %v106_v10 }
  0x9a   :  { %v503_v25 = vadd.s32 %v501_v22, %v499_v19  ;;  %v116_v34 = vor.u32 %v115_v27, %v114_v26  ;;  %v120_v35 = vshll.u32 %v842_v4, %v105_v51  ;;  %v121_v36 = vshrl.u32 %v843_v13, %v106_v10 }
  0x9b   :  { %v482_v29 = vadd.s32 %v481_v21, %v471_v60  ;;  %v957_v38 = vadd.s32 %v498_v14, %v494_v9  ;;  %v119_v40 = vor.u32 %v118_v32, %v117_v28  ;;  %vm123_vm2 = vcmp.lt.s32.totalorder %v939_v50, 1 }
  0x9c   :  { %v504_v33 = vadd.s32 %v503_v25, %v493_v7  ;;  %v122_v48 = vor.u32 %v121_v36, %v120_v35  ;;  %vm126_vm3 = vcmp.lt.s32.totalorder %v939_v50, 4  ;;  %v131_v49 = vsel %vm123_vm2, %v110_v30, %v113_v31 }
  0x9d   :  { %v955_v37 = vadd.s32 %v482_v29, %v473_v2  ;;  %vm125_vm5 = vcmp.lt.s32.totalorder %v939_v50, 3  ;;  %v132_v51 = vsel %vm126_vm3, %v119_v40, 920167782  ;;  %v571_v52 = vand.u32 2139095040, %v937_v46 }
  0x9e   :  { %v505_v42 = vadd.s32 %v504_v33, %v495_v12  ;;  %vm124_vm6 = vcmp.lt.s32.totalorder %v939_v50, 2  ;;  %v133_v56 = vsel %vm125_vm5, %v116_v34, %v132_v51  ;;  %v135_v57 = vsel %vm123_vm2, %v113_v31, %v116_v34 }
  0x9f   :  { %vm508_vm4 = vc.u32 %v955_v37, %v957_v38  ;;  %v506_v58 = vmul.u32 %v914_v6, %v932_v44  ;;  %v134_v60 = vsel %vm124_vm6, %v131_v49, %v133_v56  ;;  %v136_v62 = vsel %vm126_vm3, %v122_v48, 1326507024 }
  0xa0   :  { %v509_v54 = vadd.s32 1, %v505_v42  ;;  %v140_v55 = vand.u32 65535, %v934_v45  ;;  %v137_v2 = vsel %vm125_vm5, %v119_v40, %v136_v62  ;;  %v164_v5 = vand.u32 65535, %v134_v60 }
  0xa1   :  { %v165_v7 = vshrl.u32 %v134_v60, 16  ;;  %v138_v9 = vsel %vm124_vm6, %v135_v57, %v137_v2  ;;  %v141_v6 = vshrl.u32 %v934_v45, 16  ;;  %v572_v44 = vshrl.u32 %v571_v52, 23 }
  0xa2   :  { %v510_v0 = vsel %vm508_vm4, %v509_v54, %v505_v42  ;;  %v107_v11 = vshrl.u32 %v838_v59, %v106_v10  ;;  %v142_v12 = vand.u32 65535, %v138_v9  ;;  %v143_v14 = vshrl.u32 %v138_v9, 16 }
  0xa3   :  { %v511_v8 = vadd.s32 %v510_v0, %v506_v58  ;;  %v167_v15 = vmul.u32 %v165_v7, %v140_v55  ;;  %v168_v17 = vmul.u32 %v164_v5, %v141_v6  ;;  %v128_v19 = vsel %vm126_vm3, %v116_v34, 2102212464 }
  0xa4   :  { %v127_v18 = vsel %vm123_vm2, %v107_v11, %v110_v30  ;;  %v145_v20 = vmul.u32 %v143_v14, %v140_v55  ;;  %v146_v21 = vmul.u32 %v142_v12, %v141_v6  ;;  %v166_v23 = vmul.u32 %v164_v5, %v140_v55 }
  0xa5   :  { %v512_v16 = vadd.s32 536870912, %v511_v8  ;;  %v170_v24 = vshll.u32 %v167_v15, 16  ;;  %v788_v25 = vadd.s32 4294967169, %v572_v44  ;;  %v144_v26 = vmul.u32 %v142_v12, %v140_v55 }
  0xa6   :  { %v147_v10 = vmul.u32 %v143_v14, %v141_v6  ;;  %v148_v27 = vshll.u32 %v145_v20, 16  ;;  %v169_v28 = vmul.u32 %v165_v7, %v141_v6  ;;  %v150_v32 = vshll.u32 %v146_v21, 16 }
  0xa7   :  { %v991_v22 = vshrl.u32 %v512_v16, 30  ;;  %v172_v33 = vshll.u32 %v168_v17, 16  ;;  %vm174_vm7 = vc.u32 %v166_v23, %v170_v24  ;;  %v176_v35 = vadd.s32 %v170_v24, %v166_v23 }
  0xa8   :  { %vm152_vm8 = vc.u32 %v144_v26, %v148_v27  ;;  %v154_v30 = vadd.s32 %v148_v27, %v144_v26  ;;  %v175_v34 = vsel %vm174_vm7, 1, %v837_v3  ;;  %v129_v40 = vsel %vm125_vm5, %v113_v31, %v128_v19 }
  0xa9   :  { %v514_v29 = vshll.u32 %v991_v22, 30  ;;  %v153_v42 = vsel %vm152_vm8, 1, %v837_v3  ;;  %v177_v48 = vadd.s32 %v175_v34, %v169_v28  ;;  %v171_v51 = vshrl.u32 %v167_v15, 16 }
  0xaa   :  { %v155_v49 = vadd.s32 %v153_v42, %v147_v10  ;;  %vm156_vm9 = vc.u32 %v154_v30, %v150_v32  ;;  %vm178_vm10 = vc.u32 %v176_v35, %v172_v33  ;;  %v149_v57 = vshrl.u32 %v145_v20, 16 }
  0xab   :  { %v995_v36 = vsub.s32 %v511_v8, %v514_v29  ;;  %v157_v54 = vsel %vm156_vm9, 1, %v837_v3  ;;  %v179_v56 = vsel %vm178_vm10, 1, %v837_v3  ;;  %v578_v62 = vadd.s32 1, %v788_v25 }
  0xac   :  { %v159_v58 = vadd.s32 %v157_v54, %v155_v49  ;;  %v181_v60 = vadd.s32 %v179_v56, %v177_v48  ;;  %v151_v55 = vshrl.u32 %v146_v21, 16  ;;  %v173_v0 = vshrl.u32 %v168_v17, 16 }
  0xad   :  { %vm516_vm11 = vcmp.lt.s32.totalorder %v995_v36, 0  ;;  %v517_v52 = vsub.s32 0, %v995_v36  ;;  %v568_v2 = vand.u32 2147483647, %v937_v46  ;;  %vm579_vm12 = vcmp.gt.s32.totalorder %v578_v62, 0 }
  0xae   :  { %v160_v7 = vadd.s32 %v159_v58, %v149_v57  ;;  %v182_v8 = vadd.s32 %v181_v60, %v171_v51  ;;  %v130_v9 = vsel %vm124_vm6, %v127_v18, %v129_v40  ;;  %v580_v6 = vsel %vm579_vm12, %v578_v62, 0  ;;  %v84_v58 = vpop.permute.xlu0 %83 }
  0xaf   :  { %v518_v31 = vsel %vm516_vm11, %v517_v52, %v995_v36  ;;  %v1010_v12 = vadd.s32 %v176_v35, %v172_v33  ;;  %v575_v15 = vand.u32 8388607, %v568_v2  ;;  %v582_v16 = vand.u32 31, %v580_v6 }
  0xb0   :  { %v519_v5 = vclz %v518_v31  ;;  %v1008_v11 = vadd.s32 %v160_v7, %v151_v55  ;;  %v183_v14 = vadd.s32 %v182_v8, %v173_v0  ;;  %v184_v50 = vmul.u32 %v934_v45, %v130_v9 }
  0xb1   :  { %v583_v18 = vsub.s32 32, %v582_v16  ;;  %v576_v24 = vor.u32 8388608, %v575_v15  ;;  %v585_v27 = vshll.u32 %v838_v59, %v582_v16  ;;  %v588_v28 = vshll.u32 %v839_v61, %v582_v16 }
  0xb2   :  { %v786_v44 = vadd.s32 4294967294, %v519_v5  ;;  %vm186_vm14 = vc.u32 %v1008_v11, %v1010_v12  ;;  %v187_v17 = vadd.s32 1, %v183_v14  ;;  %v1022_v30 = vshrl.u32 %v580_v6, 5 }
  0xb3   :  { %v586_v25 = vshrl.u32 %v839_v61, %v583_v18  ;;  %v589_v26 = vshrl.u32 %v840_v63, %v583_v18  ;;  %v592_v29 = vshrl.u32 %v841_v1, %v583_v18  ;;  %v591_v45 = vshll.u32 %v840_v63, %v582_v16 }
  0xb4   :  { %vm787_vm13 = vcmp.lt.s32.totalorder %v786_v44, 0  ;;  %v188_v21 = vsel %vm186_vm14, %v187_v17, %v183_v14  ;;  %v594_v40 = vshll.u32 %v841_v1, %v582_v16  ;;  %v595_v42 = vshrl.u32 %v842_v4, %v583_v18 }
  0xb5   :  { %v522_v19 = vsel %vm787_vm13, 0, %v786_v44  ;;  %v189_v23 = vadd.s32 %v188_v21, %v184_v50  ;;  %v587_v34 = vor.u32 %v586_v25, %v585_v27  ;;  %v1025_v35 = vor.u32 %v589_v26, %v588_v28 }
  0xb6   :  { %v527_v20 = vsub.s32 4294967266, %v522_v19  ;;  %v523_v32 = vsub.s32 32, %v522_v19  ;;  %v507_v48 = vadd.s32 %v957_v38, %v955_v37  ;;  %v598_v51 = vshrl.u32 %v843_v13, %v583_v18 }
  0xb7   :  { %v190_v33 = vadd.s32 536870912, %v189_v23  ;;  %v593_v54 = vor.u32 %v592_v29, %v591_v45  ;;  %v596_v56 = vor.u32 %v595_v42, %v594_v40  ;;  %v597_v57 = vshll.u32 %v842_v4, %v582_v16 }
  0xb8   :  { %v528_v10 = vadd.s32 127, %v527_v20  ;;  %vm600_vm15 = vcmp.lt.s32.totalorder %v1022_v30, 1  ;;  %v1037_v62 = vshll.u32 %v576_v24, 8  ;;  %v525_v31 = vshrl.u32 %v507_v48, %v523_v32 }
  0xb9   :  { %v1031_v49 = vshrl.u32 %v190_v33, 30  ;;  %v599_v55 = vor.u32 %v598_v51, %v597_v57  ;;  %vm603_vm0 = vcmp.lt.s32.totalorder %v1022_v30, 4  ;;  %v608_v37 = vsel %vm600_vm15, %v587_v34, %v1025_v35 }
  0xba   :  { %v529_v52 = vshll.u32 %v528_v10, 23  ;;  %vm602_vm1 = vcmp.lt.s32.totalorder %v1022_v30, 3  ;;  %v609_v0 = vsel %vm603_vm0, %v596_v56, 920167782  ;;  %v1047_v5 = vmul.f32 %v895_v39, %v84_v58 }
  0xbb   :  { %v192_v60 = vshll.u32 %v1031_v49, 30  ;;  %v524_v7 = vshll.u32 %v995_v36, %v522_v19  ;;  %vm601_vm2 = vcmp.lt.s32.totalorder %v1022_v30, 2  ;;  %v610_v9 = vsel %vm602_vm1, %v593_v54, %v609_v0 }
  0xbc   :  { %v530_v8 = vor.u32 4788187, %v529_v52  ;;  %v611_v44 = vsel %vm601_vm2, %v608_v37, %v610_v9  ;;  %v612_v14 = vsel %vm600_vm15, %v1025_v35, %v593_v54  ;;  %v613_v39 = vsel %vm603_vm0, %v599_v55, 1326507024 }
  0xbd   :  { %v193_v38 = vsub.s32 %v189_v23, %v192_v60  ;;  %v526_v15 = vor.u32 %v525_v31, %v524_v7  ;;  %v617_v36 = vand.u32 65535, %v1037_v62  ;;  %v642_v16 = vshrl.u32 %v611_v44, 16 }
  0xbe   :  { %v614_v19 = vsel %vm602_vm1, %v596_v56, %v613_v39  ;;  %v618_v50 = vshrl.u32 %v1037_v62, 16  ;;  %v249_v20 = vand.u32 2139095040, %v1047_v5  ;;  %v531_v21 = vand.u32 2147483647, %v530_v8 }
  0xbf   :  { %vm194_vm3 = vcmp.lt.s32.totalorder %v193_v38, 0  ;;  %v195_v6 = vsub.s32 0, %v193_v38  ;;  %v615_v24 = vsel %vm601_vm2, %v612_v14, %v614_v19  ;;  %v641_v25 = vand.u32 65535, %v611_v44 }
  0xc0   :  { %v584_v26 = vshrl.u32 %v838_v59, %v583_v18  ;;  %v619_v10 = vand.u32 65535, %v615_v24  ;;  %v620_v27 = vshrl.u32 %v615_v24, 16  ;;  %v1068_v28 = vmul.u32 %v642_v16, %v617_v36 }
  0xc1   :  { %v196_v17 = vsel %vm194_vm3, %v195_v6, %v193_v38  ;;  %v533_v29 = vcvt.s32.f32 %v526_v15  ;;  %v185_v32 = vadd.s32 %v1010_v12, %v1008_v11  ;;  %v246_v45 = vand.u32 2147483647, %v1047_v5 }
  0xc2   :  { %v197_v23 = vclz %v196_v17  ;;  %v604_v40 = vsel %vm600_vm15, %v584_v26, %v587_v34  ;;  %v605_v42 = vsel %vm603_vm0, %v593_v54, 2102212464  ;;  %v622_v48 = vmul.u32 %v620_v27, %v617_v36 }
  0xc3   :  { %v623_v51 = vmul.u32 %v619_v10, %v618_v50  ;;  %v534_v18 = vmul.f32 %v533_v29, %v531_v21  ;;  %v643_v52 = vmul.u32 %v641_v25, %v617_v36  ;;  %v250_v56 = vshrl.u32 %v249_v20, 23 }
  0xc4   :  { %v780_v33 = vadd.s32 4294967294, %v197_v23  ;;  %v621_v58 = vmul.u32 %v619_v10, %v617_v36  ;;  %v625_v60 = vshll.u32 %v622_v48, 16  ;;  %v647_v11 = vshll.u32 %v1068_v28, 16 }
  0xc5   :  { %v645_v55 = vmul.u32 %v641_v25, %v618_v50  ;;  %v646_v37 = vmul.u32 %v642_v16, %v618_v50  ;;  %v624_v0 = vmul.u32 %v620_v27, %v618_v50  ;;  %v627_v34 = vshll.u32 %v623_v51, 16 }
  0xc6   :  { %vm781_vm4 = vcmp.lt.s32.totalorder %v780_v33, 0  ;;  %vm629_vm5 = vc.u32 %v621_v58, %v625_v60  ;;  %v631_v7 = vadd.s32 %v625_v60, %v621_v58  ;;  %v626_v44 = vshrl.u32 %v622_v48, 16 }
  0xc7   :  { %v200_v57 = vsel %vm781_vm4, 0, %v780_v33  ;;  %v630_v6 = vsel %vm629_vm5, 1, %v837_v3  ;;  %vm651_vm7 = vc.u32 %v643_v52, %v647_v11  ;;  %v649_v17 = vshll.u32 %v645_v55, 16 }
  0xc8   :  { %v201_v12 = vsub.s32 32, %v200_v57  ;;  %v205_v31 = vsub.s32 4294967266, %v200_v57  ;;  %v202_v54 = vshll.u32 %v193_v38, %v200_v57  ;;  %v632_v14 = vadd.s32 %v630_v6, %v624_v0 }
  0xc9   :  { %vm633_vm6 = vc.u32 %v631_v7, %v627_v34  ;;  %v652_v16 = vsel %vm651_vm7, 1, %v837_v3  ;;  %v653_v50 = vadd.s32 %v647_v11, %v643_v52  ;;  %v782_v20 = vadd.s32 4294967169, %v250_v56 }
  0xca   :  { %v203_v8 = vshrl.u32 %v185_v32, %v201_v12  ;;  %v206_v9 = vadd.s32 127, %v205_v31  ;;  %v634_v36 = vsel %vm633_vm6, 1, %v837_v3  ;;  %v535_v21 = vxor.u32 2147483648, %v534_v18 }
  0xcb   :  { %v636_v19 = vadd.s32 %v634_v36, %v632_v14  ;;  %v606_v23 = vsel %vm602_vm1, %v1025_v35, %v605_v42  ;;  %v654_v24 = vadd.s32 %v652_v16, %v646_v37  ;;  %vm415_vm8 = vcmp.lt.s32.totalorder %v898_v41, 0 }
  0xcc   :  { %v204_v15 = vor.u32 %v203_v8, %v202_v54  ;;  %v207_v39 = vshll.u32 %v206_v9, 23  ;;  %vm655_vm9 = vc.u32 %v653_v50, %v649_v17  ;;  %v628_v10 = vshrl.u32 %v623_v51, 16 }
  0xcd   :  { %v637_v25 = vadd.s32 %v636_v19, %v626_v44  ;;  %v656_v27 = vsel %vm655_vm9, 1, %v837_v3  ;;  %v256_v29 = vadd.s32 1, %v782_v20  ;;  %v607_v33 = vsel %vm601_vm2, %v604_v40, %v606_v23 }
  0xce   :  { %v208_v38 = vor.u32 4788187, %v207_v39  ;;  %v211_v32 = vcvt.s32.f32 %v204_v15  ;;  %v648_v48 = vshrl.u32 %v1068_v28, 16  ;;  %v658_v52 = vadd.s32 %v656_v27, %v654_v24 }
  0xcf   :  { %v536_v35 = vsel %vm415_vm8, %v535_v21, %v534_v18  ;;  %v1091_v42 = vadd.s32 %v637_v25, %v628_v10  ;;  %v253_v56 = vand.u32 8388607, %v246_v45  ;;  %vm257_vm10 = vcmp.gt.s32.totalorder %v256_v29, 0 }
  0xd0   :  { %v209_v26 = vand.u32 2147483647, %v208_v38  ;;  %v650_v57 = vshrl.u32 %v645_v55, 16  ;;  %v659_v58 = vadd.s32 %v658_v52, %v648_v48  ;;  %v258_v60 = vsel %vm257_vm10, %v256_v29, 0 }
  0xd1   :  { %v1095_v11 = vadd.s32 %v653_v50, %v649_v17  ;;  %v260_v30 = vand.u32 31, %v258_v60  ;;  %vm1099_vm11 = vcmp.le.f32.partialorder %v413_v43, 0.7853982  ;;  %v661_v18 = vmul.u32 %v1037_v62, %v607_v33 }
  0xd2   :  { %v212_v51 = vmul.f32 %v211_v32, %v209_v26  ;;  %v660_v40 = vadd.s32 %v659_v58, %v650_v57  ;;  %v1107_v12 = vsel %vm1099_vm11, %v898_v41, %v536_v35  ;;  %v254_v31 = vor.u32 8388608, %v253_v56 }
  0xd3   :  { %vm663_vm12 = vc.u32 %v1091_v42, %v1095_v11  ;;  %v261_v55 = vsub.s32 32, %v260_v30  ;;  %v1111_v34 = vshrl.u32 %v258_v60, 5  ;;  %v263_v43 = vshll.u32 %v838_v59, %v260_v30 }
  0xd4   :  { %v213_v37 = vxor.u32 2147483648, %v212_v51  ;;  %v664_v0 = vadd.s32 1, %v660_v40  ;;  %v266_v62 = vshll.u32 %v839_v61, %v260_v30  ;;  %v269_v8 = vshll.u32 %v840_v63, %v260_v30 }
  0xd5   :  { %v264_v7 = vshrl.u32 %v839_v61, %v261_v55  ;;  %v267_v54 = vshrl.u32 %v840_v63, %v261_v55  ;;  %v270_v6 = vshrl.u32 %v841_v1, %v261_v55  ;;  %v272_v44 = vshll.u32 %v841_v1, %v260_v30 }
  0xd6   :  { %v665_v9 = vsel %vm663_vm12, %v664_v0, %v660_v40  ;;  %v273_v14 = vshrl.u32 %v842_v4, %v261_v55  ;;  %vm93_vm13 = vcmp.lt.s32.totalorder %v903_v47, 0  ;;  %v275_v19 = vshll.u32 %v842_v4, %v260_v30 }
  0xd7   :  { %v666_v15 = vadd.s32 %v665_v9, %v661_v18  ;;  %v1122_v39 = vor.u32 %v264_v7, %v263_v43  ;;  %v1124_v36 = vor.u32 %v267_v54, %v266_v62  ;;  %v1126_v17 = vor.u32 %v270_v6, %v269_v8 }
  0xd8   :  { %v274_v61 = vor.u32 %v273_v14, %v272_v44  ;;  %v276_v63 = vshrl.u32 %v843_v13, %v261_v55  ;;  %v1132_v16 = vmul.f32 %v1107_v12, %v1107_v12  ;;  %vm1136_vm14 = vcmp.le.f32.partialorder %v91_v53, 0.7853982 }
  0xd9   :  { %v214_v50 = vsel %vm93_vm13, %v213_v37, %v212_v51  ;;  %v667_v20 = vadd.s32 536870912, %v666_v15  ;;  %vm278_vm15 = vcmp.lt.s32.totalorder %v1111_v34, 1  ;;  %vm281_vm0 = vcmp.lt.s32.totalorder %v1111_v34, 4 }
  0xda   :  { %v277_v21 = vor.u32 %v276_v63, %v275_v19  ;;  %v1144_v4 = vshll.u32 %v254_v31, 8  ;;  %vm280_vm1 = vcmp.lt.s32.totalorder %v1111_v34, 3  ;;  %v286_v53 = vsel %vm278_vm15, %v1122_v39, %v1124_v36 }
  0xdb   :  { %v1146_v13 = vshrl.u32 %v667_v20, 30  ;;  %v287_v38 = vsel %vm281_vm0, %v274_v61, 920167782  ;;  %v1158_v23 = vsel %vm1136_vm14, %v903_v47, %v214_v50  ;;  %v290_v25 = vsel %vm278_vm15, %v1124_v36, %v1126_v17 }
  0xdc   :  { %v288_v24 = vsel %vm280_vm1, %v1126_v17, %v287_v38  ;;  %v291_v26 = vsel %vm281_vm0, %v277_v21, 1326507024  ;;  %vm279_vm2 = vcmp.lt.s32.totalorder %v1111_v34, 2  ;;  %v549_v27 = vmul.f32 -0.00019511016, %v1132_v16 }
  0xdd   :  { %v669_v10 = vshll.u32 %v1146_v13, 30  ;;  %v289_v29 = vsel %vm279_vm2, %v286_v53, %v288_v24  ;;  %v292_v32 = vsel %vm280_vm1, %v274_v61, %v291_v26  ;;  %v1178_v33 = vmul.f32 %v1158_v23, %v1158_v23 }
  0xde   :  { %v293_v52 = vsel %vm279_vm2, %v290_v25, %v292_v32  ;;  %v295_v35 = vand.u32 65535, %v1144_v4  ;;  %v296_v56 = vshrl.u32 %v1144_v4, 16  ;;  %v320_v58 = vshrl.u32 %v289_v29, 16 }
  0xdf   :  { %v670_v48 = vsub.s32 %v666_v15, %v669_v10  ;;  %v297_v51 = vand.u32 65535, %v293_v52  ;;  %v298_v57 = vshrl.u32 %v293_v52, 16  ;;  %v319_v30 = vand.u32 65535, %v289_v29 }
  0xe0   :  { %v550_v40 = vadd.f32 0.008332121, %v549_v27  ;;  %v662_v37 = vadd.s32 %v1095_v11, %v1091_v42  ;;  %v262_v43 = vshrl.u32 %v838_v59, %v261_v55  ;;  %v322_v7 = vmul.u32 %v320_v58, %v295_v35 }
  0xe1   :  { %vm671_vm3 = vcmp.lt.s32.totalorder %v670_v48, 0  ;;  %v672_v60 = vsub.s32 0, %v670_v48  ;;  %v300_v18 = vmul.u32 %v298_v57, %v295_v35  ;;  %v301_v31 = vmul.u32 %v297_v51, %v296_v56 }
  0xe2   :  { %v227_v62 = vmul.f32 -0.00019511016, %v1178_v33  ;;  %v299_v8 = vmul.u32 %v297_v51, %v295_v35  ;;  %v302_v6 = vmul.u32 %v298_v57, %v296_v56  ;;  %v321_v44 = vmul.u32 %v319_v30, %v295_v35 }
  0xe3   :  { %v673_v0 = vsel %vm671_vm3, %v672_v60, %v670_v48  ;;  %v303_v9 = vshll.u32 %v300_v18, 16  ;;  %v323_v14 = vmul.u32 %v319_v30, %v296_v56  ;;  %v325_v15 = vshll.u32 %v322_v7, 16 }
  0xe4   :  { %v674_v54 = vclz %v673_v0  ;;  %v305_v19 = vshll.u32 %v301_v31, 16  ;;  %v324_v42 = vmul.u32 %v320_v58, %v296_v56  ;;  %v304_v26 = vshrl.u32 %v300_v18, 16 }
  0xe5   :  { %vm307_vm4 = vc.u32 %v299_v8, %v303_v9  ;;  %v309_v63 = vadd.s32 %v303_v9, %v299_v8  ;;  %v327_v11 = vshll.u32 %v323_v14, 16  ;;  %vm329_vm5 = vc.u32 %v321_v44, %v325_v15 }
  0xe6   :  { %v789_v61 = vadd.s32 4294967294, %v674_v54  ;;  %v308_v50 = vsel %vm307_vm4, 1, %v837_v3  ;;  %v330_v55 = vsel %vm329_vm5, 1, %v837_v3  ;;  %v331_v53 = vadd.s32 %v325_v15, %v321_v44 }
  0xe7   :  { %v310_v59 = vadd.s32 %v308_v50, %v302_v6  ;;  %vm311_vm7 = vc.u32 %v309_v63, %v305_v19  ;;  %v332_v38 = vadd.s32 %v330_v55, %v324_v42  ;;  %v283_v29 = vsel %vm281_vm0, %v1126_v17, 2102212464 }
  0xe8   :  { %vm790_vm6 = vcmp.lt.s32.totalorder %v789_v61, 0  ;;  %v312_v21 = vsel %vm311_vm7, 1, %v837_v3  ;;  %v306_v32 = vshrl.u32 %v301_v31, 16  ;;  %vm333_vm9 = vc.u32 %v331_v53, %v327_v11 }
  0xe9   :  { %v677_v20 = vsel %vm790_vm6, 0, %v789_v61  ;;  %v314_v10 = vadd.s32 %v312_v21, %v310_v59  ;;  %v334_v51 = vsel %vm333_vm9, 1, %v837_v3  ;;  %v282_v57 = vsel %vm278_vm15, %v262_v43, %v1122_v39 }
  0xea   :  { %v678_v24 = vsub.s32 32, %v677_v20  ;;  %v682_v25 = vsub.s32 4294967266, %v677_v20  ;;  %v679_v27 = vshll.u32 %v670_v48, %v677_v20  ;;  %v326_v58 = vshrl.u32 %v322_v7, 16 }
  0xeb   :  { %v315_v56 = vadd.s32 %v314_v10, %v304_v26  ;;  %v336_v60 = vadd.s32 %v334_v51, %v332_v38  ;;  %v284_v48 = vsel %vm280_vm1, %v1124_v36, %v283_v29  ;;  %v228_v31 = vadd.f32 0.008332121, %v227_v62 }
  0xec   :  { %v680_v52 = vshrl.u32 %v662_v37, %v678_v24  ;;  %v683_v35 = vadd.s32 127, %v682_v25  ;;  %v328_v37 = vshrl.u32 %v323_v14, 16  ;;  %v551_v54 = vmul.f32 %v550_v40, %v1132_v16 }
  0xed   :  { %v1201_v17 = vadd.s32 %v315_v56, %v306_v32  ;;  %v337_v0 = vadd.s32 %v336_v60, %v326_v58  ;;  %v335_v8 = vadd.s32 %v331_v53, %v327_v11  ;;  %v285_v39 = vsel %vm279_vm2, %v282_v57, %v284_v48 }
  0xee   :  { %v681_v30 = vor.u32 %v680_v52, %v679_v27  ;;  %v684_v18 = vshll.u32 %v683_v35, 23  ;;  %v537_v6 = vsub.s32 4, %v991_v22  ;;  %v229_v36 = vmul.f32 %v228_v31, %v1178_v33 }
  0xef   :  { %v338_v43 = vadd.s32 %v337_v0, %v328_v37  ;;  %vm341_vm10 = vc.u32 %v1201_v17, %v335_v8  ;;  %v552_v62 = vadd.f32 -0.16666654, %v551_v54  ;;  %v215_v14 = vsub.s32 4, %v1031_v49 }
  0xf0   :  { %v685_v3 = vor.u32 4788187, %v684_v18  ;;  %v688_v9 = vcvt.s32.f32 %v681_v30  ;;  %v339_v40 = vmul.u32 %v1144_v4, %v285_v39  ;;  %v542_v34 = vmul.f32 -0.001358992, %v1132_v16 }
  0xf1   :  { %v342_v44 = vadd.s32 1, %v338_v43  ;;  %v538_v63 = vsel %vm415_vm8, %v537_v6, %v991_v22  ;;  %v230_v50 = vadd.f32 -0.16666654, %v229_v36  ;;  %v553_v11 = vmul.f32 %v552_v62, %v1132_v16 }
  0xf2   :  { %v686_v7 = vand.u32 2147483647, %v685_v3  ;;  %v543_v42 = vadd.f32 0.041655596, %v542_v34  ;;  %v216_v59 = vsel %vm93_vm13, %v215_v14, %v1031_v49  ;;  %vm570_vm12 = vcmp.lt.s32.totalorder %v937_v46, 0 }
  0xf3   :  { %v343_v61 = vsel %vm341_vm10, %v342_v44, %v338_v43  ;;  %v540_v53 = vsel %vm1099_vm11, 0, %v538_v63  ;;  %v231_v22 = vmul.f32 %v230_v50, %v1178_v33  ;;  %v218_v38 = vsel %vm1136_vm14, 0, %v216_v59  ;;  %v1264_v50 = vld [vmem:[%s1306_s3] ss:$0 sm:$0xff]  ;;  %v736_v59 = vpop.permute.xlu2 %735  ;;  %s844_s3 = smov [#allocation2]  }
  0xf4   :  { %v689_v15 = vmul.f32 %v688_v9, %v686_v7  ;;  %v344_v19 = vadd.s32 %v343_v61, %v339_v40  ;;  %v544_v4 = vmul.f32 %v543_v42, %v1132_v16  ;;  %v220_v24 = vmul.f32 -0.001358992, %v1178_v33  ;;  %v1258_v40 = vld [vmem:[%s1307_s4] ss:$0 sm:$0xff]  ;;  %s765_s4 = sshll.u32 %s844_s3, 4  ;;  %s766_s4 = int_to_ptr.vmem [resolvable:$true] %s765_s4 }
  0xf5   :  { %v554_v49 = vadd.f32 1.0, %v553_v11  ;;  %v557_v32 = vadd.s32 3, %v540_v53  ;;  %vm1235_vm8 = vcmp.le.f32.partialorder %v568_v2, 0.7853982  ;;  %v235_v52 = vadd.s32 3, %v218_v38 }
  0xf6   :  { %v690_v55 = vxor.u32 2147483648, %v689_v15  ;;  %v345_v20 = vadd.s32 536870912, %v344_v19  ;;  %v545_v25 = vadd.f32 -0.4999988, %v544_v4  ;;  %v221_v27 = vadd.f32 0.041655596, %v220_v24 }
  0xf7   :  { %v232_v35 = vadd.f32 1.0, %v231_v22  ;;  %v555_v57 = vmul.f32 %v554_v49, %v1107_v12  ;;  %v558_v2 = vand.u32 3, %v557_v32  ;;  %v236_v48 = vand.u32 3, %v235_v52 }
  0xf8   :  { %v1221_v21 = vshrl.u32 %v345_v20, 30  ;;  %v691_v26 = vsel %vm570_vm12, %v690_v55, %v689_v15  ;;  %v546_v29 = vmul.f32 %v545_v25, %v1132_v16  ;;  %v222_v51 = vmul.f32 %v221_v27, %v1178_v33 }
  0xf9   :  { %v1242_v56 = vsel %vm1235_vm8, %v937_v46, %v691_v26  ;;  %v233_v31 = vmul.f32 %v232_v35, %v1158_v23  ;;  %v561_v54 = vxor.u32 2147483648, %v555_v57  ;;  %vm234_vm13 = vweird.f32 %v903_v47  ;;  %v750_v47 = vpop.permute.xlu0 %749 }
  0xfa   :  { %v347_v10 = vshll.u32 %v1221_v21, 30  ;;  %v547_v58 = vadd.f32 1.0, %v546_v29  ;;  %v223_v60 = vadd.f32 -0.4999988, %v222_v51  ;;  %v1248_v30 = vmul.f32 %v1242_v56, %v1242_v56 }
  0xfb   :  { %vm560_vm14 = vcmp.eq.s32.totalorder %v558_v2, 0  ;;  %v340_v7 = vadd.s32 %v335_v8, %v1201_v17  ;;  %vm238_vm15 = vcmp.eq.s32.totalorder %v236_v48, 0  ;;  %v239_v6 = vxor.u32 2147483648, %v233_v31 }
  0xfc   :  { %v348_v1 = vsub.s32 %v344_v19, %v347_v10  ;;  %v224_v0 = vmul.f32 %v223_v60, %v1178_v33  ;;  %v564_v3 = vxor.u32 2147483648, %v547_v58  ;;  %v704_v43 = vmul.f32 -0.00019511016, %v1248_v30 }
  0xfd   :  { %v562_v9 = vsel %vm560_vm14, %v547_v58, %v561_v54  ;;  %vm563_vm1 = vcmp.eq.s32.totalorder %v558_v2, 2  ;;  %vm241_vm2 = vcmp.eq.s32.totalorder %v236_v48, 2  ;;  %vm559_vm3 = vcmp.lt.s32.totalorder %v558_v2, 2 }
  0xfe   :  { %vm349_vm11 = vcmp.lt.s32.totalorder %v348_v1, 0  ;;  %v350_v16 = vsub.s32 0, %v348_v1  ;;  %v225_v12 = vadd.f32 1.0, %v224_v0  ;;  %v565_v33 = vsel %vm563_vm1, %v564_v3, %v555_v57 }
  0xff   :  { %v566_v15 = vsel %vm559_vm3, %v562_v9, %v565_v33  ;;  %v705_v17 = vadd.f32 0.008332121, %v704_v43  ;;  %vm237_vm4 = vcmp.lt.s32.totalorder %v236_v48, 2  ;;  %vm556_vm5 = vweird.f32 %v898_v41 }
 0x100   :  { %v351_v18 = vsel %vm349_vm11, %v350_v16, %v348_v1  ;;  %v242_v36 = vxor.u32 2147483648, %v225_v12  ;;  %v240_v14 = vsel %vm238_vm15, %v225_v12, %v239_v6  ;;  %v567_v11 = vsel %vm556_vm5, nan, %v566_v15 }
 0x101   :  { %v352_v37 = vclz %v351_v18  ;;  %v697_v55 = vmul.f32 -0.001358992, %v1248_v30  ;;  %v743_v41 = vmul.f32 %v1258_v40, %v736_v59  ;;  %v706_v22 = vmul.f32 %v705_v17, %v1248_v30 }
 0x102   :  { %v243_v8 = vsel %vm241_vm2, %v242_v36, %v233_v31  ;;  %vm248_vm6 = vcmp.lt.s32.totalorder %v1047_v5, 0  ;;  %vm1278_vm7 = vcmp.le.f32.partialorder %v246_v45, 0.7853982  ;;  %v370_v60 = vsub.s32 4, %v1221_v21 }
 0x103   :  { %v783_v39 = vadd.s32 4294967294, %v352_v37  ;;  %v244_v63 = vsel %vm237_vm4, %v240_v14, %v243_v8  ;;  %v698_v10 = vadd.f32 0.041655596, %v697_v55  ;;  %v707_v27 = vadd.f32 -0.16666654, %v706_v22 }
 0x104   :  { %v245_v42 = vsel %vm234_vm13, nan, %v244_v63  ;;  %v371_v54 = vsel %vm248_vm6, %v370_v60, %v1221_v21  ;;  %vm389_vm14 = vweird.f32 %v1047_v5  ;;  %vm711_vm15 = vweird.f32 %v937_v46 }
 0x105   :  { %vm784_vm0 = vcmp.lt.s32.totalorder %v783_v39, 0  ;;  %v723_v53 = vsub.f32 %v245_v42, %v567_v11  ;;  %v699_v35 = vmul.f32 %v698_v10, %v1248_v30  ;;  %v708_v51 = vmul.f32 %v707_v27, %v1248_v30 }
 0x106   :  { %v355_v23 = vsel %vm784_vm0, 0, %v783_v39  ;;  %v373_v9 = vsel %vm1278_vm7, 0, %v371_v54 }
 0x107   :  { %v356_v44 = vsub.s32 32, %v355_v23  ;;  %v360_v62 = vsub.s32 4294967266, %v355_v23  ;;  %v357_v61 = vshll.u32 %v348_v1, %v355_v23  ;;  %v728_v24 = vmul.f32 %v1264_v50, %v723_v53  ;;  %v741_v53 = vpop.permute.xlu2 %740 }
 0x108   :  { %v692_v1 = vsub.s32 4, %v1146_v13  ;;  %v700_v48 = vadd.f32 -0.4999988, %v699_v35  ;;  %v709_v31 = vadd.f32 1.0, %v708_v51 }
 0x109   :  { %v358_v34 = vshrl.u32 %v340_v7, %v356_v44  ;;  %v361_v19 = vadd.s32 127, %v360_v62  ;;  %v745_v26 = vadd.f32 %v743_v41, %v728_v24  ;;  %v390_v44 = vadd.s32 3, %v373_v9 }
 0x10a   :  { %v693_v58 = vsel %vm570_vm12, %v692_v1, %v1146_v13  ;;  %v701_v13 = vmul.f32 %v700_v48, %v1248_v30  ;;  %v710_v43 = vmul.f32 %v709_v31, %v1242_v56 }
 0x10b   :  { %v359_v20 = vor.u32 %v358_v34, %v357_v61  ;;  %v362_v4 = vshll.u32 %v361_v19, 23  ;;  %v757_v32 = vmul.f32 %v750_v47, %v745_v26  ;;  %v695_v45 = vsel %vm1235_vm8, 0, %v693_v58 }
 0x10c   :  { %v712_v12 = vadd.s32 3, %v695_v45  ;;  %v702_v33 = vadd.f32 1.0, %v701_v13  ;;  %v716_v21 = vxor.u32 2147483648, %v710_v43  ;;  %v391_v30 = vand.u32 3, %v390_v44 }
 0x10d   :  { %v363_v38 = vor.u32 4788187, %v362_v4  ;;  %v366_v49 = vcvt.s32.f32 %v359_v20  ;;  %759 = vst [vmem:[#allocation2] sm:$0xff] %v757_v32 }
 0x10e   :  { %v713_v28 = vand.u32 3, %v712_v12  ;;  %v719_v8 = vxor.u32 2147483648, %v702_v33  ;;  %vm393_vm8 = vcmp.eq.s32.totalorder %v391_v30, 0  ;;  %vm396_vm11 = vcmp.eq.s32.totalorder %v391_v30, 2 }
 0x10f   :  { %v364_v25 = vand.u32 2147483647, %v363_v38  ;;  %vm392_vm13 = vcmp.lt.s32.totalorder %v391_v30, 2  ;;  %v744_v38 = vmul.f32 %v1258_v40, %v741_v53 }
 0x110   :  { %vm715_vm9 = vcmp.eq.s32.totalorder %v713_v28, 0  ;;  %vm718_vm10 = vcmp.eq.s32.totalorder %v713_v28, 2  ;;  %vm714_vm12 = vcmp.lt.s32.totalorder %v713_v28, 2 }
 0x111   :  { %v367_v29 = vmul.f32 %v366_v49, %v364_v25  ;;  %v717_v34 = vsel %vm715_vm9, %v702_v33, %v716_v21  ;;  %v720_v63 = vsel %vm718_vm10, %v719_v8, %v710_v43  ;;  %v755_v25 = vpop.permute.xlu1 %754 }
 0x112   :  { %v721_v42 = vsel %vm714_vm12, %v717_v34, %v720_v63 }
 0x113   :  { %v368_v52 = vxor.u32 2147483648, %v367_v29  ;;  %v722_v4 = vsel %vm711_vm15, nan, %v721_v42 }
 0x115   :  { %v369_v16 = vsel %vm248_vm6, %v368_v52, %v367_v29 }
 0x116   :  { %v372_v2 = vsel %vm1278_vm7, %v1047_v5, %v369_v16 }
 0x117   :  { %v374_v18 = vmul.f32 %v372_v2, %v372_v2 }
 0x119   :  { %v382_v37 = vmul.f32 -0.00019511016, %v374_v18  ;;  %v375_v0 = vmul.f32 -0.001358992, %v374_v18 }
 0x11b   :  { %v383_v3 = vadd.f32 0.008332121, %v382_v37  ;;  %v376_v39 = vadd.f32 0.041655596, %v375_v0 }
 0x11d   :  { %v384_v7 = vmul.f32 %v383_v3, %v374_v18  ;;  %v377_v6 = vmul.f32 %v376_v39, %v374_v18 }
 0x11f   :  { %v385_v36 = vadd.f32 -0.16666654, %v384_v7  ;;  %v378_v23 = vadd.f32 -0.4999988, %v377_v6 }
 0x121   :  { %v386_v62 = vmul.f32 %v385_v36, %v374_v18  ;;  %v379_v14 = vmul.f32 %v378_v23, %v374_v18 }
 0x123   :  { %v387_v15 = vadd.f32 1.0, %v386_v62  ;;  %v380_v17 = vadd.f32 1.0, %v379_v14 }
 0x125   :  { %v388_v61 = vmul.f32 %v387_v15, %v372_v2  ;;  %v397_v56 = vxor.u32 2147483648, %v380_v17 }
 0x127   :  { %v394_v19 = vxor.u32 2147483648, %v388_v61  ;;  %v398_v59 = vsel %vm396_vm11, %v397_v56, %v388_v61 }
 0x129   :  { %v395_v11 = vsel %vm393_vm8, %v380_v17, %v394_v19 }
 0x12a   :  { %v399_v55 = vsel %vm392_vm13, %v395_v11, %v398_v59 }
 0x12b   :  { %v400_v20 = vsel %vm389_vm14, nan, %v399_v55 }
 0x12c   :  { %v724_v41 = vsub.f32 %v400_v20, %v722_v4 }
 0x12e   :  { %v729_v22 = vmul.f32 %v1264_v50, %v724_v41 }
 0x130   :  { %v746_v24 = vadd.f32 %v744_v38, %v729_v22 }
 0x132   :  { %v758_v5 = vmul.f32 %v755_v25, %v746_v24 }
 0x134   :  { %760 = vst [vmem:[#allocation2 + $0x8] sm:$0xff] %v758_v5 }
 0x135   :  { %773 = dma.vmem_to_hbm [thread:$0]  %s766_s4, 256, %s768_s6, [#allocation3], %s845_s7, %s845_s7, %s846_s8  }
 0x136   :  { %835 = dma.done.wait [#allocation3], 256  }
 0x137   :  { %836 = vsyncadd [#allocation3], 4294967040 }
 0x138   :  { %778 = vsyncpa [#allocation3], 1 }

</bundles_post_ra>
